<compile_context>
chip_gen: v5e
topology: v5e:2x2
jax: 0.10.0
libtpu: 0.0.40
codegen_flags: <defaults>
</compile_context>

<pallas_src>
import functools

import jax
import jax.numpy as jnp
import numpy as np
from jax.experimental import pallas as pl
from jax.experimental.pallas import tpu as pltpu


def _act(v, sigma):
    if sigma == "tanh":
        return jnp.tanh(v)
    if sigma == "sigmoid":
        return jax.nn.sigmoid(v)
    if sigma == "relu":
        return jnp.maximum(v, 0.0)
    if sigma == "identity":
        return v
    return jnp.tanh(v)  # torch module falls back to tanh


def _round_up(x, m):
    return ((x + m - 1) // m) * m


def _ren_kernel(xi_ref, u_ref, wx_ref, wu_ref, b_ref, m_ref, out_ref, *,
                nq, nq_p, lc, sigma):
    """One batch tile, (features, batch) layout, fully resident in VMEM.

    state = [v-rows (nq_p) | output-rows (nx)] with batch on the lane axis:
        v0    = C1 @ xi + D12 @ u + bv
        w_i   = act(v_i)                  (sequential in i, strictly-lower D11)
        state += m[:, i] ⊗ w_i            (advances v AND accumulates B1 @ w)
        out   = A @ xi + B2 @ u + bx + B1 @ w
    """
    wx = wx_ref[...]                       # (nq_p+nx, nx)
    wu = wu_ref[...]                       # (nq_p+nx, nu)
    b = b_ref[...]                         # (nq_p+nx, 1)
    m = m_ref[...]                         # (nq_p+nx, nq)
    tb = xi_ref.shape[1]

    # Lane chunks keep the live state (~(nq_p+nx)/8 * lc/128 vregs) bounded.
    for c in range(tb // lc):
        s = c * lc
        xi_c = xi_ref[:, s:s + lc]         # (nx, lc)
        u_c = u_ref[:, s:s + lc]           # (nu, lc)
        state = (jnp.dot(wx, xi_c, preferred_element_type=jnp.float32)
                 + jnp.dot(wu, u_c, preferred_element_type=jnp.float32)
                 + b)                      # (nq_p+nx, lc)
        # Strictly-lower-triangular recurrence: row i only depends on rows < i,
        # so one outer-product FMA per step is exact.  nq is small & static.
        for i in range(nq):
            w_i = _act(state[i:i + 1, :], sigma)          # (1, lc) lane-dense
            state = state + m[:, i:i + 1] * w_i
        out_ref[:, s:s + lc] = state[nq_p:, :].astype(out_ref.dtype)


@functools.partial(jax.jit, static_argnames=("sigma",))
def _ren_forward(xi, u, wx, wu, b, m, *, sigma):
    batch, nx = xi.shape
    nu = u.shape[1]
    nq = m.shape[1]
    nq_p = wx.shape[0] - nx

    LANE = 128
    tb_target = 2048
    bp = _round_up(max(batch, 1), LANE)
    if bp <= 2 * LANE:
        tb = bp                            # tiny batch: one block
    else:
        # >=2 tiles (v7x dual TensorCore), ~tb_target rows/tile, minimal pad.
        n_tiles = max(2, pl.cdiv(bp, tb_target))
        tb = _round_up(pl.cdiv(bp, n_tiles), LANE)
    grid = pl.cdiv(bp, tb)
    bp = grid * tb

    lc = tb
    for cand in (512, 384, 256, 128):
        if tb % cand == 0:
            lc = cand
            break

    # Pad batch then transpose to (features, batch); XLA fuses pad+transpose.
    xi_t = jnp.pad(xi.astype(jnp.float32), ((0, bp - batch), (0, 0))).T   # (nx, bp)
    u_t = jnp.pad(u.astype(jnp.float32), ((0, bp - batch), (0, 0))).T     # (nu, bp)

    kernel = functools.partial(_ren_kernel, nq=nq, nq_p=nq_p, lc=lc, sigma=sigma)
    out_t = pl.pallas_call(
        kernel,
        out_shape=jax.ShapeDtypeStruct((nx, bp), jnp.float32),
        grid_spec=pltpu.PrefetchScalarGridSpec(
            num_scalar_prefetch=0,
            grid=(grid,),
            in_specs=[
                pl.BlockSpec((nx, tb), lambda g: (0, g)),
                pl.BlockSpec((nu, tb), lambda g: (0, g)),
                pl.BlockSpec(wx.shape, lambda g: (0, 0)),
                pl.BlockSpec(wu.shape, lambda g: (0, 0)),
                pl.BlockSpec(b.shape, lambda g: (0, 0)),
                pl.BlockSpec(m.shape, lambda g: (0, 0)),
            ],
            out_specs=pl.BlockSpec((nx, tb), lambda g: (0, g)),
        ),
        compiler_params=pltpu.CompilerParams(
            dimension_semantics=("parallel",)),
    )(xi_t, u_t, wx, wu, b, m)
    return out_t[:, :batch].T


class SystemGeneralMomentMatching:
    """JAX/Pallas port of _System_general_moment_matching (forward pass only)."""

    def __init__(self, nx, ny, nu, nq, sigma="tanh", epsilon=1e-2,
                 bias=False, linear_output=False, key=None):
        self.nx, self.ny, self.nu, self.nq = nx, ny, nu, nq
        self.sigma = sigma
        self.epsilon = epsilon
        if key is None:
            key = jax.random.PRNGKey(0)
        ks = jax.random.split(key, 12)
        std = 1.0
        # Same parameter shapes as the torch __init__ (synthetic deterministic init).
        self.B2 = jax.random.normal(ks[0], (nx, nu), jnp.float32) * std
        self.D12 = jax.random.normal(ks[1], (nq, nu), jnp.float32) * std
        self.D22 = jax.random.normal(ks[2], (ny, nu), jnp.float32) * std
        self.A = jax.random.normal(ks[3], (nx, nx), jnp.float32) * std
        self.B1 = jax.random.normal(ks[4], (nx, nq), jnp.float32) * std
        self.C1 = jax.random.normal(ks[5], (nq, nx), jnp.float32) * std
        self.D11 = jax.random.normal(ks[6], (nq, nq), jnp.float32) * std
        self.C2 = jax.random.normal(ks[7], (ny, nx), jnp.float32) * std
        if linear_output:
            self.D21 = jnp.zeros((ny, nq), jnp.float32)
        else:
            self.D21 = jax.random.normal(ks[8], (ny, nq), jnp.float32) * std
        if bias:
            self.bx = jax.random.normal(ks[9], (nx, 1), jnp.float32) * std
            self.bv = jax.random.normal(ks[10], (nq, 1), jnp.float32) * std
            self.by = jax.random.normal(ks[11], (ny, 1), jnp.float32) * std
        else:
            self.bx = jnp.zeros((nx, 1), jnp.float32)
            self.bv = jnp.zeros((nq, 1), jnp.float32)
            self.by = jnp.zeros((ny, 1), jnp.float32)
        self._pack_weights()

    def _pack_weights(self):
        """Hoisted weight preprocessing (constant across forward calls).

        Transposed-layout packing with the v-rows padded to a sublane multiple:
          wx_pack = [C1 ; A]        (nq_p+nx, nx)
          wu_pack = [D12 ; B2]      (nq_p+nx, nu)
          b_pack  = [bv ; bx]       (nq_p+nx, 1)
          m_pack  = [tril(D11,-1) ; B1]   (nq_p+nx, nq)   (per-step FMA columns)
        """
        nq, nx = self.nq, self.nx
        nq_p = _round_up(nq, 8)
        pad_q = ((0, nq_p - nq), (0, 0))
        C1p = jnp.pad(self.C1, pad_q)
        D12p = jnp.pad(self.D12, pad_q)
        bvp = jnp.pad(self.bv, pad_q)
        Lp = jnp.pad(jnp.tril(self.D11, -1), pad_q)          # (nq_p, nq)
        self.nq_p = nq_p
        self.wx_pack = jnp.concatenate([C1p, self.A], axis=0).astype(jnp.float32)
        self.wu_pack = jnp.concatenate([D12p, self.B2], axis=0).astype(jnp.float32)
        self.b_pack = jnp.concatenate([bvp, self.bx], axis=0).astype(jnp.float32)
        self.m_pack = jnp.concatenate([Lp, self.B1], axis=0).astype(jnp.float32)

    def forward(self, t, xi, u):
        del t  # unused, as in the torch module
        return _ren_forward(xi, u, self.wx_pack, self.wu_pack,
                            self.b_pack, self.m_pack, sigma=self.sigma)


def _forward_reference(model, xi, u):
    """Pure-numpy replica of the torch forward for correctness checking."""
    xi = np.asarray(xi, np.float32)
    u = np.asarray(u, np.float32)
    C1 = np.asarray(model.C1)
    D12 = np.asarray(model.D12)
    D11 = np.asarray(model.D11)
    A = np.asarray(model.A)
    B1 = np.asarray(model.B1)
    B2 = np.asarray(model.B2)
    bv = np.asarray(model.bv)
    bx = np.asarray(model.bx)
    L = np.tril(D11, -1)

    def act(v):
        if model.sigma == "tanh":
            return np.tanh(v)
        if model.sigma == "sigmoid":
            return 1.0 / (1.0 + np.exp(-v))
        if model.sigma == "relu":
            return np.maximum(v, 0.0)
        if model.sigma == "identity":
            return v
        return np.tanh(v)

    B = xi.shape[0]
    w = np.zeros((B, model.nq), np.float32)
    for i in range(model.nq):
        v = xi @ C1[i, :] + w @ L[i, :] + bv[i, 0] + u @ D12[i, :]
        w[:, i] = act(v)
    return xi @ A.T + w @ B1.T + np.ones((B, 1), np.float32) @ bx.T + u @ B2.T


if __name__ == "__main__":
    nx, ny, nu, nq = 32, 4, 16, 8

    key = jax.random.PRNGKey(0)
    k_model, k_xi, k_u, k_xi2, k_u2 = jax.random.split(key, 5)

    model = SystemGeneralMomentMatching(nx, ny, nu, nq, sigma="tanh",
                                        epsilon=1e-2, bias=False,
                                        linear_output=False, key=k_model)

    # Small batch: single-block path.
    batch = 8
    xi = jax.random.normal(k_xi, (batch, nx), jnp.float32)
    u = jax.random.normal(k_u, (batch, nu), jnp.float32)
    out = jax.block_until_ready(model.forward(0.0, xi, u))
    ref = _forward_reference(model, xi, u)
    np.testing.assert_allclose(np.asarray(out), ref, rtol=5e-4, atol=5e-4)

    # Larger batch: exercises the padded multi-tile 'parallel' batch grid.
    batch2 = 600
    xi2 = jax.random.normal(k_xi2, (batch2, nx), jnp.float32)
    u2 = jax.random.normal(k_u2, (batch2, nu), jnp.float32)
    out2 = jax.block_until_ready(model.forward(0.0, xi2, u2))
    ref2 = _forward_reference(model, xi2, u2)
    np.testing.assert_allclose(np.asarray(out2), ref2, rtol=5e-4, atol=5e-4)

    print("KERNEL_OK")
</pallas_src>

<mosaic_0001>
module attributes {stable_mosaic.version = 11 : i64} {
  func.func @_ren_kernel(%arg0: i32, %arg1: memref<32x128xf32, #tpu.memory_space<vmem>>, %arg2: memref<16x128xf32, #tpu.memory_space<vmem>>, %arg3: memref<40x32xf32, #tpu.memory_space<vmem>>, %arg4: memref<40x16xf32, #tpu.memory_space<vmem>>, %arg5: memref<40x1xf32, #tpu.memory_space<vmem>>, %arg6: memref<40x8xf32, #tpu.memory_space<vmem>>, %arg7: memref<32x128xf32, #tpu.memory_space<vmem>>) attributes {dimension_semantics = [#tpu.dimension_semantics<parallel>], iteration_bounds = array<i64: 1>, scalar_prefetch = 0 : i64, scratch_operands = 0 : i64, tpu.core_type = #tpu.core_type<tc>, window_params = [{transform_indices = @transform_0, window_bounds = array<i64: 32, 128>}, {transform_indices = @transform_1, window_bounds = array<i64: 16, 128>}, {pipeline_mode = #tpu.pipeline_mode<synchronous>, transform_indices = @transform_2, window_bounds = array<i64: 40, 32>}, {pipeline_mode = #tpu.pipeline_mode<synchronous>, transform_indices = @transform_3, window_bounds = array<i64: 40, 16>}, {pipeline_mode = #tpu.pipeline_mode<synchronous>, transform_indices = @transform_4, window_bounds = array<i64: 40, 1>}, {pipeline_mode = #tpu.pipeline_mode<synchronous>, transform_indices = @transform_5, window_bounds = array<i64: 40, 8>}, {transform_indices = @transform_6, window_bounds = array<i64: 32, 128>}]} {
    %c0 = arith.constant 0 : index
    %c0_0 = arith.constant 0 : index
    %0 = vector.load %arg3[%c0, %c0_0] : memref<40x32xf32, #tpu.memory_space<vmem>>, vector<40x32xf32>
    %c0_1 = arith.constant 0 : index
    %c0_2 = arith.constant 0 : index
    %1 = vector.load %arg4[%c0_1, %c0_2] : memref<40x16xf32, #tpu.memory_space<vmem>>, vector<40x16xf32>
    %c0_3 = arith.constant 0 : index
    %c0_4 = arith.constant 0 : index
    %2 = vector.load %arg5[%c0_3, %c0_4] : memref<40x1xf32, #tpu.memory_space<vmem>>, vector<40x1xf32>
    %c0_5 = arith.constant 0 : index
    %c0_6 = arith.constant 0 : index
    %3 = vector.load %arg6[%c0_5, %c0_6] : memref<40x8xf32, #tpu.memory_space<vmem>>, vector<40x8xf32>
    %c0_7 = arith.constant 0 : index
    %c0_8 = arith.constant 0 : index
    %4 = vector.load %arg1[%c0_7, %c0_8] : memref<32x128xf32, #tpu.memory_space<vmem>>, vector<32x128xf32>
    %c0_9 = arith.constant 0 : index
    %c0_10 = arith.constant 0 : index
    %5 = vector.load %arg2[%c0_9, %c0_10] : memref<16x128xf32, #tpu.memory_space<vmem>>, vector<16x128xf32>
    %cst = arith.constant dense<0.000000e+00> : vector<40x128xf32>
    %6 = tpu.matmul %0, %4, %cst {dimension_numbers = #tpu.dot_dimension_numbers<[1], [0], [0], [1], [0, 0, 1, 1], [], []>} : vector<40x32xf32>, vector<32x128xf32>, vector<40x128xf32> -> vector<40x128xf32>
    %cst_11 = arith.constant dense<0.000000e+00> : vector<40x128xf32>
    %7 = tpu.matmul %1, %5, %cst_11 {dimension_numbers = #tpu.dot_dimension_numbers<[1], [0], [0], [1], [0, 0, 1, 1], [], []>} : vector<40x16xf32>, vector<16x128xf32>, vector<40x128xf32> -> vector<40x128xf32>
    %8 = arith.addf %6, %7 : vector<40x128xf32>
    %9 = vector.broadcast %2 : vector<40x1xf32> to vector<40x128xf32>
    %10 = arith.addf %8, %9 : vector<40x128xf32>
    %11 = vector.extract_strided_slice %10 {offsets = [0, 0], sizes = [1, 128], strides = [1, 1]} : vector<40x128xf32> to vector<1x128xf32>
    %12 = math.tanh %11 : vector<1x128xf32>
    %13 = vector.extract_strided_slice %3 {offsets = [0, 0], sizes = [40, 1], strides = [1, 1]} : vector<40x8xf32> to vector<40x1xf32>
    %14 = vector.broadcast %13 : vector<40x1xf32> to vector<40x128xf32>
    %15 = vector.broadcast %12 : vector<1x128xf32> to vector<40x128xf32>
    %16 = arith.mulf %14, %15 : vector<40x128xf32>
    %17 = arith.addf %10, %16 : vector<40x128xf32>
    %18 = vector.extract_strided_slice %17 {offsets = [1, 0], sizes = [1, 128], strides = [1, 1]} : vector<40x128xf32> to vector<1x128xf32>
    %19 = math.tanh %18 : vector<1x128xf32>
    %20 = vector.extract_strided_slice %3 {offsets = [0, 1], sizes = [40, 1], strides = [1, 1]} : vector<40x8xf32> to vector<40x1xf32>
    %21 = vector.broadcast %20 : vector<40x1xf32> to vector<40x128xf32>
    %22 = vector.broadcast %19 : vector<1x128xf32> to vector<40x128xf32>
    %23 = arith.mulf %21, %22 : vector<40x128xf32>
    %24 = arith.addf %17, %23 : vector<40x128xf32>
    %25 = vector.extract_strided_slice %24 {offsets = [2, 0], sizes = [1, 128], strides = [1, 1]} : vector<40x128xf32> to vector<1x128xf32>
    %26 = math.tanh %25 : vector<1x128xf32>
    %27 = vector.extract_strided_slice %3 {offsets = [0, 2], sizes = [40, 1], strides = [1, 1]} : vector<40x8xf32> to vector<40x1xf32>
    %28 = vector.broadcast %27 : vector<40x1xf32> to vector<40x128xf32>
    %29 = vector.broadcast %26 : vector<1x128xf32> to vector<40x128xf32>
    %30 = arith.mulf %28, %29 : vector<40x128xf32>
    %31 = arith.addf %24, %30 : vector<40x128xf32>
    %32 = vector.extract_strided_slice %31 {offsets = [3, 0], sizes = [1, 128], strides = [1, 1]} : vector<40x128xf32> to vector<1x128xf32>
    %33 = math.tanh %32 : vector<1x128xf32>
    %34 = vector.extract_strided_slice %3 {offsets = [0, 3], sizes = [40, 1], strides = [1, 1]} : vector<40x8xf32> to vector<40x1xf32>
    %35 = vector.broadcast %34 : vector<40x1xf32> to vector<40x128xf32>
    %36 = vector.broadcast %33 : vector<1x128xf32> to vector<40x128xf32>
    %37 = arith.mulf %35, %36 : vector<40x128xf32>
    %38 = arith.addf %31, %37 : vector<40x128xf32>
    %39 = vector.extract_strided_slice %38 {offsets = [4, 0], sizes = [1, 128], strides = [1, 1]} : vector<40x128xf32> to vector<1x128xf32>
    %40 = math.tanh %39 : vector<1x128xf32>
    %41 = vector.extract_strided_slice %3 {offsets = [0, 4], sizes = [40, 1], strides = [1, 1]} : vector<40x8xf32> to vector<40x1xf32>
    %42 = vector.broadcast %41 : vector<40x1xf32> to vector<40x128xf32>
    %43 = vector.broadcast %40 : vector<1x128xf32> to vector<40x128xf32>
    %44 = arith.mulf %42, %43 : vector<40x128xf32>
    %45 = arith.addf %38, %44 : vector<40x128xf32>
    %46 = vector.extract_strided_slice %45 {offsets = [5, 0], sizes = [1, 128], strides = [1, 1]} : vector<40x128xf32> to vector<1x128xf32>
    %47 = math.tanh %46 : vector<1x128xf32>
    %48 = vector.extract_strided_slice %3 {offsets = [0, 5], sizes = [40, 1], strides = [1, 1]} : vector<40x8xf32> to vector<40x1xf32>
    %49 = vector.broadcast %48 : vector<40x1xf32> to vector<40x128xf32>
    %50 = vector.broadcast %47 : vector<1x128xf32> to vector<40x128xf32>
    %51 = arith.mulf %49, %50 : vector<40x128xf32>
    %52 = arith.addf %45, %51 : vector<40x128xf32>
    %53 = vector.extract_strided_slice %52 {offsets = [6, 0], sizes = [1, 128], strides = [1, 1]} : vector<40x128xf32> to vector<1x128xf32>
    %54 = math.tanh %53 : vector<1x128xf32>
    %55 = vector.extract_strided_slice %3 {offsets = [0, 6], sizes = [40, 1], strides = [1, 1]} : vector<40x8xf32> to vector<40x1xf32>
    %56 = vector.broadcast %55 : vector<40x1xf32> to vector<40x128xf32>
    %57 = vector.broadcast %54 : vector<1x128xf32> to vector<40x128xf32>
    %58 = arith.mulf %56, %57 : vector<40x128xf32>
    %59 = arith.addf %52, %58 : vector<40x128xf32>
    %60 = vector.extract_strided_slice %59 {offsets = [7, 0], sizes = [1, 128], strides = [1, 1]} : vector<40x128xf32> to vector<1x128xf32>
    %61 = math.tanh %60 : vector<1x128xf32>
    %62 = vector.extract_strided_slice %3 {offsets = [0, 7], sizes = [40, 1], strides = [1, 1]} : vector<40x8xf32> to vector<40x1xf32>
    %63 = vector.broadcast %62 : vector<40x1xf32> to vector<40x128xf32>
    %64 = vector.broadcast %61 : vector<1x128xf32> to vector<40x128xf32>
    %65 = arith.mulf %63, %64 : vector<40x128xf32>
    %66 = arith.addf %59, %65 : vector<40x128xf32>
    %67 = vector.extract_strided_slice %66 {offsets = [8, 0], sizes = [32, 128], strides = [1, 1]} : vector<40x128xf32> to vector<32x128xf32>
    %c0_12 = arith.constant 0 : index
    %c0_13 = arith.constant 0 : index
    %68 = vector.load %arg7[%c0_12, %c0_13] : memref<32x128xf32, #tpu.memory_space<vmem>>, vector<32x128xf32>
    tpu.vector_store %arg7[%c0_12, %c0_13], %67 {strides = array<i32>} : memref<32x128xf32, #tpu.memory_space<vmem>>, vector<32x128xf32>,
    return
  }
  func.func @transform_0(%arg0: i32) -> (i32, i32) {
    %c0_i32 = arith.constant 0 : i32
    %c0_i32_0 = arith.constant 0 : i32
    return %c0_i32, %arg0 : i32, i32
  }
  func.func @transform_1(%arg0: i32) -> (i32, i32) {
    %c0_i32 = arith.constant 0 : i32
    %c0_i32_0 = arith.constant 0 : i32
    return %c0_i32, %arg0 : i32, i32
  }
  func.func @transform_2(%arg0: i32) -> (i32, i32) {
    %c0_i32 = arith.constant 0 : i32
    %c0_i32_0 = arith.constant 0 : i32
    %c0_i32_1 = arith.constant 0 : i32
    return %c0_i32, %c0_i32_0 : i32, i32
  }
  func.func @transform_3(%arg0: i32) -> (i32, i32) {
    %c0_i32 = arith.constant 0 : i32
    %c0_i32_0 = arith.constant 0 : i32
    %c0_i32_1 = arith.constant 0 : i32
    return %c0_i32, %c0_i32_0 : i32, i32
  }
  func.func @transform_4(%arg0: i32) -> (i32, i32) {
    %c0_i32 = arith.constant 0 : i32
    %c0_i32_0 = arith.constant 0 : i32
    %c0_i32_1 = arith.constant 0 : i32
    return %c0_i32, %c0_i32_0 : i32, i32
  }
  func.func @transform_5(%arg0: i32) -> (i32, i32) {
    %c0_i32 = arith.constant 0 : i32
    %c0_i32_0 = arith.constant 0 : i32
    %c0_i32_1 = arith.constant 0 : i32
    return %c0_i32, %c0_i32_0 : i32, i32
  }
  func.func @transform_6(%arg0: i32) -> (i32, i32) {
    %c0_i32 = arith.constant 0 : i32
    %c0_i32_0 = arith.constant 0 : i32
    return %c0_i32, %arg0 : i32, i32
  }
}

</mosaic_0001>

<bundles_post_ra>
// kernel: _ren_forward.1
= control target key start
LH: loop header
LB: loop body
LE: loop exit
PB: predicated region body
PF: predicated region fallthrough
CT: control target
= control target key end

     0   :  { %v502_v0 = vmov 0   ;;  %vm49_vm0 = vcmask 130048   ;;  %vm97_vm1 = vcmask 261120   ;;  %v503_v26 = vmov 1   ;;  %s713_s4 = inlined_call_operand.vmem [shape: f32[40,1], index: 4, kind: input, shape index: {}]   ;;  %s714_s0 = inlined_call_operand.vmem [shape: f32[32,128], index: 0, kind: input, shape index: {}]   ;;  %s715_s1 = inlined_call_operand.vmem [shape: f32[16,128], index: 1, kind: input, shape index: {}]   ;;  %s716_s3 = inlined_call_operand.vmem [shape: f32[40,16], index: 3, kind: input, shape index: {}]   ;;  %s717_s2 = inlined_call_operand.vmem [shape: f32[40,32], index: 2, kind: input, shape index: {}]   ;;  %s718_s5 = inlined_call_operand.vmem [shape: f32[40,8], index: 5, kind: input, shape index: {}]   ;;  %s719_s6 = inlined_call_operand.vmem [shape: f32[32,128], index: 6, kind: output, shape index: {}]  }
   0x1   :  { %463 = vset.pattern.permute.xlu1 %v502_v0  ;;  %v35_v1 = vld [vmem:[%s713_s4 + $0x10] sm:$0xff]  ;;  %v46_v2 = vld [vmem:[%s714_s0 + $0x18] sm:$0xff]  ;;  %462 = vset.pattern.permute.xlu0 %v502_v0  ;;  %v48_v4 = vld [vmem:[%s715_s1 + $0x8] sm:$0xff]  ;;  %v504_v28 = vmov 2   ;;  %v505_v29 = vmov 3   ;;  %v506_v30 = vmov 4  }
   0x2   :  { %v45_v3 = vld [vmem:[%s714_s0 + $0x10] sm:$0xff]  ;;  %157 = vperm.xlu1 %463, %v35_v1   ;;  %125 = vmatpush.msra.mxu1 %v46_v2  ;;  %v47_v5 = vld [vmem:[%s715_s1] sm:$0xff]  ;;  %v44_v6 = vld [vmem:[%s714_s0 + $0x8] sm:$0xff]  ;;  %v507_v31 = vmov 5   ;;  %v508_v32 = vmov 6   ;;  %v509_v33 = vmov 7  }
   0x3   :  { %450 = vmatpush.msra.mxu2 %v46_v2  ;;  %79 = vmatpush.msra.mxu0 %v48_v4  ;;  %v28_v7 = vld [vmem:[%s716_s3] sm:$0xff]  ;;  %v31_v9 = vld [vmem:[%s716_s3 + $0x18] sm:$0xff]  ;;  %v29_v15 = vld [vmem:[%s716_s3 + $0x8] sm:$0xff] }
   0x4   :  { %126 = vmatpush.msra.mxu1 %v45_v3  ;;  %448 = vmatpush.msra.mxu3 %v48_v4  ;;  %v43_v8 = vld [vmem:[%s714_s0] sm:$0xff]  ;;  %v26_v11 = vld [vmem:[%s717_s2 + $0x18] sm:$0xff]  ;;  %v24_v17 = vld [vmem:[%s717_s2 + $0x8] sm:$0xff] }
   0x5   :  { %451 = vmatpush.msra.mxu2 %v45_v3  ;;  %80 = vmatpush.msra.mxu0 %v47_v5  ;;  %v23_v10 = vld [vmem:[%s717_s2] sm:$0xff]  ;;  %v36_v12 = vld [vmem:[%s713_s4 + $0x18] sm:$0xff]  ;;  %v607_v19 = vld [vmem:[%s718_s5 + $0x10] sm:$0xff] }
   0x6   :  { %127 = vmatpush.msra.mxu1 %v44_v6  ;;  %449 = vmatpush.msra.mxu3 %v47_v5  ;;  %v33_v13 = vld [vmem:[%s713_s4] sm:$0xff]  ;;  %v34_v20 = vld [vmem:[%s713_s4 + $0x8] sm:$0xff]  ;;  %v30_v22 = vld [vmem:[%s716_s3 + $0x10] sm:$0xff] }
   0x7   :  { %452 = vmatpush.msra.mxu2 %v44_v6  ;;  %438 = vmatmul.msk.f32.vlgmr.msra.gmra.mxu0 %vm49_vm0, %v28_v7  ;;  %v37_v14 = vld [vmem:[%s713_s4 + $0x20] sm:$0xff]  ;;  %v25_v23 = vld [vmem:[%s717_s2 + $0x10] sm:$0xff]  ;;  %v632_v24 = vld [vmem:[%s718_s5 + $0x8] sm:$0xff] }
   0x8   :  { %128 = vmatpush.msra.mxu1 %v43_v8  ;;  %441 = vmatmul.msk.f32.vlgmr.msra.gmra.mxu3 %vm49_vm0, %v31_v9  ;;  %v32_v16 = vld [vmem:[%s716_s3 + $0x20] sm:$0xff]  ;;  %v41_v25 = vld [vmem:[%s718_s5 + $0x18] sm:$0xff] }
   0x9   :  { %453 = vmatpush.msra.mxu2 %v43_v8  ;;  %443 = vmatmul.msk.f32.vlgmr.msra.gmra.mxu1 %vm97_vm1, %v23_v10  ;;  %v27_v18 = vld [vmem:[%s717_s2 + $0x20] sm:$0xff] }
   0xa   :  { %446 = vmatmul.msk.f32.vlgmr.msra.gmra.mxu2 %vm97_vm1, %v26_v11  ;;  %162 = vperm.xlu1 %463, %v36_v12   ;;  %v617_v21 = vld [vmem:[%s718_s5] sm:$0xff] }
   0xb   :  { %147 = vperm.xlu0 %462, %v33_v13   ;;  %464 = vset.pattern.permute.xlu2 %v502_v0  ;;  %v643_v27 = vld [vmem:[%s718_s5 + $0x20] sm:$0xff] }
   0xc   :  { %167 = vperm.xlu2 %464, %v37_v14  }
   0xf   :  { %439 = vmatmul.msk.f32.gmra.mxu0 %vm49_vm0, %v29_v15 }
  0x10   :  { %442 = vmatmul.msk.f32.gmra.mxu3 %vm49_vm0, %v32_v16 }
  0x11   :  { %444 = vmatmul.msk.f32.gmra.mxu1 %vm97_vm1, %v24_v17 }
  0x12   :  { %447 = vmatmul.msk.f32.gmra.mxu2 %vm97_vm1, %v27_v18  ;;  %188 = vperm.xlu1 %463, %v607_v19  }
  0x13   :  { %152 = vperm.xlu0 %462, %v34_v20  }
  0x14   :  { %178 = vperm.xlu2 %464, %v617_v21  }
  0x17   :  { %440 = vmatmul.msk.f32.gmra.mxu0 %vm49_vm0, %v30_v22 }
  0x19   :  { %445 = vmatmul.msk.f32.gmra.mxu1 %vm97_vm1, %v25_v23 }
  0x1a   :  { %465 = vset.pattern.permute.xlu1 %v503_v26 }
  0x1b   :  { %214 = vperm.xlu1 %465, %v617_v21   ;;  %183 = vperm.xlu0 %462, %v632_v24  }
  0x1c   :  { %193 = vperm.xlu2 %464, %v41_v25  }
  0x23   :  { %226 = vperm.xlu1 %465, %v41_v25   ;;  %198 = vperm.xlu0 %462, %v643_v27  }
  0x24   :  { %466 = vset.pattern.permute.xlu2 %v503_v26 }
  0x25   :  { %218 = vperm.xlu2 %466, %v632_v24  }
  0x2b   :  { %468 = vset.pattern.permute.xlu1 %v504_v28  ;;  %467 = vset.pattern.permute.xlu0 %v503_v26 }
  0x2c   :  { %246 = vperm.xlu1 %468, %v617_v21   ;;  %222 = vperm.xlu0 %467, %v607_v19  }
  0x2d   :  { %230 = vperm.xlu2 %466, %v643_v27  }
  0x34   :  { %258 = vperm.xlu1 %468, %v41_v25   ;;  %470 = vset.pattern.permute.xlu0 %v504_v28 }
  0x35   :  { %469 = vset.pattern.permute.xlu2 %v504_v28  ;;  %254 = vperm.xlu0 %470, %v607_v19  }
  0x36   :  { %250 = vperm.xlu2 %469, %v632_v24  }
  0x3c   :  { %471 = vset.pattern.permute.xlu1 %v505_v29 }
  0x3d   :  { %278 = vperm.xlu1 %471, %v617_v21   ;;  %473 = vset.pattern.permute.xlu0 %v505_v29 }
  0x3e   :  { %262 = vperm.xlu2 %469, %v643_v27   ;;  %286 = vperm.xlu0 %473, %v607_v19  }
  0x45   :  { %290 = vperm.xlu1 %471, %v41_v25  }
  0x46   :  { %472 = vset.pattern.permute.xlu2 %v505_v29  ;;  %476 = vset.pattern.permute.xlu0 %v506_v30 }
  0x47   :  { %282 = vperm.xlu2 %472, %v632_v24   ;;  %318 = vperm.xlu0 %476, %v607_v19  }
  0x4d   :  { %474 = vset.pattern.permute.xlu1 %v506_v30 }
  0x4e   :  { %310 = vperm.xlu1 %474, %v617_v21  }
  0x4f   :  { %294 = vperm.xlu2 %472, %v643_v27   ;;  %479 = vset.pattern.permute.xlu0 %v507_v31 }
  0x50   :  { %350 = vperm.xlu0 %479, %v607_v19  }
  0x56   :  { %322 = vperm.xlu1 %474, %v41_v25  }
  0x57   :  { %475 = vset.pattern.permute.xlu2 %v506_v30 }
  0x58   :  { %314 = vperm.xlu2 %475, %v632_v24   ;;  %482 = vset.pattern.permute.xlu0 %v508_v32 }
  0x59   :  { %382 = vperm.xlu0 %482, %v607_v19  }
  0x5e   :  { %477 = vset.pattern.permute.xlu1 %v507_v31 }
  0x5f   :  { %342 = vperm.xlu1 %477, %v617_v21  }
  0x60   :  { %326 = vperm.xlu2 %475, %v643_v27  }
  0x61   :  { %485 = vset.pattern.permute.xlu0 %v509_v33 }
  0x62   :  { %414 = vperm.xlu0 %485, %v41_v25  }
  0x66   :  { %v168_v34 = vpop.permute.xlu2 %167 }
  0x67   :  { %354 = vperm.xlu1 %477, %v41_v25  }
  0x68   :  { %478 = vset.pattern.permute.xlu2 %v507_v31 }
  0x69   :  { %346 = vperm.xlu2 %478, %v632_v24  }
  0x6e   :  { %v179_v35 = vpop.permute.xlu2 %178 }
  0x6f   :  { %480 = vset.pattern.permute.xlu1 %v508_v32 }
  0x70   :  { %374 = vperm.xlu1 %480, %v617_v21  }
  0x71   :  { %358 = vperm.xlu2 %478, %v643_v27  }
  0x74   :  { %v158_v36 = vpop.permute.xlu1 %157 }
  0x76   :  { %v194_v37 = vpop.permute.xlu2 %193 }
  0x78   :  { %386 = vperm.xlu1 %480, %v41_v25  }
  0x79   :  { %481 = vset.pattern.permute.xlu2 %v508_v32 }
  0x7a   :  { %378 = vperm.xlu2 %481, %v632_v24  }
  0x7c   :  { %v163_v38 = vpop.permute.xlu1 %162 }
  0x7d   :  { %v148_v39 = vpop.permute.xlu0 %147 }
  0x7f   :  { %v219_v40 = vpop.permute.xlu2 %218 }
  0x80   :  { %483 = vset.pattern.permute.xlu1 %v509_v33 }
  0x81   :  { %406 = vperm.xlu1 %483, %v632_v24  }
  0x82   :  { %390 = vperm.xlu2 %481, %v643_v27  }
  0x84   :  { %v189_v41 = vpop.permute.xlu1 %188  ;;  %v82_v42 = vpop.f32.mrf.mxu0 }
  0x85   :  { %v153_v43 = vpop.permute.xlu0 %152 }
  0x86   :  { %v130_v44 = vpop.f32.mrf.mxu1 }
  0x87   :  { %v131_v45 = vadd.f32 %v130_v44, %v82_v42  ;;  %v231_v46 = vpop.permute.xlu2 %230 }
  0x89   :  { %v170_v47 = vadd.f32 %v148_v39, %v131_v45  ;;  %418 = vperm.xlu1 %483, %v643_v27  }
  0x8a   :  { %484 = vset.pattern.permute.xlu2 %v509_v33 }
  0x8b   :  { %486 = vtanh.f32 %v170_v47  ;;  %v91_v48 = vpop.f32.mrf.mxu3  ;;  %410 = vperm.xlu2 %484, %v607_v19  }
  0x8c   :  { %v85_v49 = vpop.f32.mrf.mxu0 }
  0x8d   :  { %v139_v50 = vpop.f32.mrf.mxu2  ;;  %v215_v51 = vpop.permute.xlu1 %214 }
  0x8e   :  { %v184_v52 = vpop.permute.xlu0 %183  ;;  %v133_v53 = vpop.f32.mrf.mxu1  ;;  %v140_v54 = vadd.f32 %v139_v50, %v91_v48 }
  0x8f   :  { %v134_v9 = vadd.f32 %v133_v53, %v85_v49 }
  0x90   :  { %v251_v55 = vpop.permute.xlu2 %250  ;;  %v173_v60 = vadd.f32 %v163_v38, %v140_v54 }
  0x91   :  { %v487_v56 = vpop.eup %486  ;;  %v171_v16 = vadd.f32 %v153_v43, %v134_v9 }
  0x92   :  { %v201_v57 = vperm.slane %v487_v56, 0 }
  0x93   :  { %v94_v58 = vpop.f32.mrf.mxu3 }
  0x94   :  { %v202_v59 = vmul.f32 %v201_v57, %v179_v35  ;;  %v205_v61 = vmul.f32 %v201_v57, %v194_v37  ;;  %v88_v62 = vpop.f32.mrf.mxu0  ;;  %v204_v63 = vmul.f32 %v201_v57, %v189_v41  ;;  %v203_v15 = vmul.f32 %v201_v57, %v184_v52 }
  0x95   :  { %v142_v0 = vpop.f32.mrf.mxu2  ;;  %v227_v1 = vpop.permute.xlu1 %226 }
  0x96   :  { %v207_v2 = vadd.f32 %v202_v59, %v170_v47  ;;  %v143_v3 = vadd.f32 %v142_v0, %v94_v58  ;;  %v210_v4 = vadd.f32 %v205_v61, %v173_v60  ;;  %v199_v5 = vpop.permute.xlu0 %198  ;;  %v136_v6 = vpop.f32.mrf.mxu1  ;;  %v208_v21 = vadd.f32 %v203_v15, %v171_v16 }
  0x97   :  { %v206_v7 = vmul.f32 %v201_v57, %v199_v5  ;;  %v137_v8 = vadd.f32 %v136_v6, %v88_v62 }
  0x98   :  { %488 = vtanh.f32 %v207_v2  ;;  %v174_v10 = vadd.f32 %v168_v34, %v143_v3  ;;  %v263_v11 = vpop.permute.xlu2 %262 }
  0x99   :  { %v172_v12 = vadd.f32 %v158_v36, %v137_v8 }
  0x9a   :  { %v211_v13 = vadd.f32 %v206_v7, %v174_v10 }
  0x9b   :  { %v209_v14 = vadd.f32 %v204_v63, %v172_v12 }
  0x9e   :  { %v489_v17 = vpop.eup %488  ;;  %v247_v18 = vpop.permute.xlu1 %246 }
  0x9f   :  { %v233_v19 = vperm.slane %v489_v17, 1  ;;  %v223_v20 = vpop.permute.xlu0 %222 }
  0xa1   :  { %v235_v22 = vmul.f32 %v233_v19, %v219_v40  ;;  %v234_v23 = vmul.f32 %v233_v19, %v215_v51  ;;  %v238_v24 = vmul.f32 %v233_v19, %v231_v46  ;;  %v237_v25 = vmul.f32 %v233_v19, %v227_v1  ;;  %v672_v26 = vpop.permute.xlu2 %282 }
  0xa2   :  { %v236_v27 = vmul.f32 %v233_v19, %v223_v20 }
  0xa3   :  { %v239_v28 = vadd.f32 %v234_v23, %v207_v2  ;;  %v242_v29 = vadd.f32 %v237_v25, %v210_v4  ;;  %v240_v30 = vadd.f32 %v235_v22, %v208_v21  ;;  %v243_v31 = vadd.f32 %v238_v24, %v211_v13 }
  0xa4   :  { %v241_v32 = vadd.f32 %v236_v27, %v209_v14 }
  0xa5   :  { %490 = vtanh.f32 %v239_v28 }
  0xa6   :  { %v259_v33 = vpop.permute.xlu1 %258 }
  0xa7   :  { %v255_v53 = vpop.permute.xlu0 %254 }
  0xa9   :  { %v674_v34 = vpop.permute.xlu2 %294 }
  0xab   :  { %v491_v35 = vpop.eup %490 }
  0xac   :  { %v265_v36 = vperm.slane %v491_v35, 2 }
  0xae   :  { %v267_v37 = vmul.f32 %v265_v36, %v251_v55  ;;  %v266_v38 = vmul.f32 %v265_v36, %v247_v18  ;;  %v270_v39 = vmul.f32 %v265_v36, %v263_v11  ;;  %v269_v10 = vmul.f32 %v265_v36, %v259_v33 }
  0xaf   :  { %v279_v40 = vpop.permute.xlu1 %278  ;;  %v268_v11 = vmul.f32 %v265_v36, %v255_v53 }
  0xb0   :  { %v272_v41 = vadd.f32 %v267_v37, %v240_v30  ;;  %v271_v42 = vadd.f32 %v266_v38, %v239_v28  ;;  %v676_v43 = vadd.f32 %v270_v39, %v243_v31  ;;  %v287_v59 = vpop.permute.xlu0 %286  ;;  %v274_v17 = vadd.f32 %v269_v10, %v242_v29 }
  0xb1   :  { %v273_v18 = vadd.f32 %v268_v11, %v241_v32 }
  0xb2   :  { %492 = vtanh.f32 %v271_v42  ;;  %v315_v44 = vpop.permute.xlu2 %314 }
  0xb7   :  { %v291_v45 = vpop.permute.xlu1 %290 }
  0xb8   :  { %v493_v46 = vpop.eup %492 }
  0xb9   :  { %v678_v47 = vperm.slane %v493_v46, 3  ;;  %v319_v0 = vpop.permute.xlu0 %318 }
  0xba   :  { %v681_v50 = vpop.permute.xlu2 %326 }
  0xbb   :  { %v298_v48 = vmul.f32 %v678_v47, %v279_v40  ;;  %v301_v15 = vmul.f32 %v678_v47, %v291_v45  ;;  %v300_v16 = vmul.f32 %v678_v47, %v287_v59  ;;  %v299_v21 = vmul.f32 %v678_v47, %v672_v26 }
  0xbd   :  { %v303_v49 = vadd.f32 %v298_v48, %v271_v42  ;;  %v306_v22 = vadd.f32 %v301_v15, %v274_v17  ;;  %v305_v23 = vadd.f32 %v300_v16, %v273_v18  ;;  %v304_v32 = vadd.f32 %v299_v21, %v272_v41 }
  0xbf   :  { %494 = vtanh.f32 %v303_v49 }
  0xc0   :  { %v311_v51 = vpop.permute.xlu1 %310 }
  0xc2   :  { %v351_v5 = vpop.permute.xlu0 %350 }
  0xc3   :  { %v347_v55 = vpop.permute.xlu2 %346 }
  0xc5   :  { %v495_v52 = vpop.eup %494 }
  0xc6   :  { %v683_v54 = vperm.slane %v495_v52, 4 }
  0xc8   :  { %v330_v56 = vmul.f32 %v683_v54, %v311_v51  ;;  %v323_v57 = vpop.permute.xlu1 %322  ;;  %v332_v19 = vmul.f32 %v683_v54, %v319_v0  ;;  %v331_v28 = vmul.f32 %v683_v54, %v315_v44  ;;  %v302_v44 = vmul.f32 %v678_v47, %v674_v34 }
  0xc9   :  { %v333_v20 = vmul.f32 %v683_v54, %v323_v57  ;;  %v334_v41 = vmul.f32 %v683_v54, %v681_v50 }
  0xca   :  { %v335_v58 = vadd.f32 %v330_v56, %v303_v49  ;;  %v337_v30 = vadd.f32 %v332_v19, %v305_v23  ;;  %v336_v26 = vadd.f32 %v331_v28, %v304_v32  ;;  %v307_v59 = vadd.f32 %v302_v44, %v676_v43 }
  0xcb   :  { %v686_v60 = vpop.permute.xlu2 %358  ;;  %v383_v13 = vpop.permute.xlu0 %382  ;;  %v338_v31 = vadd.f32 %v333_v20, %v306_v22 }
  0xcc   :  { %496 = vtanh.f32 %v335_v58 }
  0xd1   :  { %v343_v61 = vpop.permute.xlu1 %342 }
  0xd2   :  { %v497_v62 = vpop.eup %496 }
  0xd3   :  { %v361_v63 = vperm.slane %v497_v62, 5 }
  0xd4   :  { %v379_v4 = vpop.permute.xlu2 %378  ;;  %v415_v37 = vpop.permute.xlu0 %414 }
  0xd5   :  { %v362_v1 = vmul.f32 %v361_v63, %v343_v61  ;;  %v364_v24 = vmul.f32 %v361_v63, %v351_v5  ;;  %v363_v38 = vmul.f32 %v361_v63, %v347_v55  ;;  %v366_v34 = vmul.f32 %v361_v63, %v686_v60 }
  0xd6   :  { %v339_v61 = vadd.f32 %v334_v41, %v307_v59 }
  0xd7   :  { %v367_v2 = vadd.f32 %v362_v1, %v335_v58  ;;  %v369_v39 = vadd.f32 %v364_v24, %v337_v30  ;;  %v368_v52 = vadd.f32 %v363_v38, %v336_v26 }
  0xd8   :  { %v371_v50 = vadd.f32 %v366_v34, %v339_v61 }
  0xd9   :  { %498 = vtanh.f32 %v367_v2  ;;  %v355_v3 = vpop.permute.xlu1 %354 }
  0xda   :  { %v365_v25 = vmul.f32 %v361_v63, %v355_v3 }
  0xdc   :  { %v391_v12 = vpop.permute.xlu2 %390  ;;  %v370_v40 = vadd.f32 %v365_v25, %v338_v31 }
  0xdf   :  { %v499_v6 = vpop.eup %498 }
  0xe0   :  { %v393_v7 = vperm.slane %v499_v6, 6 }
  0xe2   :  { %v375_v8 = vpop.permute.xlu1 %374  ;;  %v396_v33 = vmul.f32 %v393_v7, %v383_v13  ;;  %v395_v45 = vmul.f32 %v393_v7, %v379_v4  ;;  %v398_v62 = vmul.f32 %v393_v7, %v391_v12 }
  0xe3   :  { %v394_v9 = vmul.f32 %v393_v7, %v375_v8 }
  0xe4   :  { %v401_v46 = vadd.f32 %v396_v33, %v369_v39  ;;  %v400_v55 = vadd.f32 %v395_v45, %v368_v52  ;;  %v403_v0 = vadd.f32 %v398_v62, %v371_v50 }
  0xe5   :  { %v399_v14 = vadd.f32 %v394_v9, %v367_v2  ;;  %v411_v36 = vpop.permute.xlu2 %410 }
  0xe7   :  { %500 = vtanh.f32 %v399_v14 }
  0xea   :  { %v387_v27 = vpop.permute.xlu1 %386 }
  0xeb   :  { %v397_v35 = vmul.f32 %v393_v7, %v387_v27 }
  0xed   :  { %v501_v29 = vpop.eup %500  ;;  %v402_v48 = vadd.f32 %v397_v35, %v370_v40 }
  0xee   :  { %v421_v42 = vperm.slane %v501_v29, 7 }
  0xf0   :  { %v423_v49 = vmul.f32 %v421_v42, %v411_v36  ;;  %v424_v51 = vmul.f32 %v421_v42, %v415_v37 }
  0xf2   :  { %v427_v53 = vadd.f32 %v423_v49, %v401_v46  ;;  %v428_v56 = vadd.f32 %v424_v51, %v402_v48 }
  0xf3   :  { %v407_v57 = vpop.permute.xlu1 %406 }
  0xf4   :  { %431 = vst [vmem:[%s719_s6 + $0x8] sm:$0xff] %v427_v53  ;;  %v422_v58 = vmul.f32 %v421_v42, %v407_v57 }
  0xf5   :  { %432 = vst [vmem:[%s719_s6 + $0x10] sm:$0xff] %v428_v56 }
  0xf6   :  { %v426_v47 = vadd.f32 %v422_v58, %v400_v55 }
  0xf8   :  { %430 = vst [vmem:[%s719_s6] sm:$0xff] %v426_v47 }
  0xfb   :  { %v419_v54 = vpop.permute.xlu1 %418 }
  0xfc   :  { %v425_v1 = vmul.f32 %v421_v42, %v419_v54 }
  0xfe   :  { %v429_v2 = vadd.f32 %v425_v1, %v403_v0 }
 0x100   :  { %433 = vst [vmem:[%s719_s6 + $0x18] sm:$0xff] %v429_v2 }

</bundles_post_ra>
